<compile_context>
chip_gen: v5e
topology: v5e:2x2
jax: 0.10.0
libtpu: 0.0.40
codegen_flags: <defaults>
</compile_context>

<pallas_src>
import functools

import jax
import jax.numpy as jnp
import numpy as np
from jax.experimental import pallas as pl
from jax.experimental.pallas import tpu as pltpu


def _conv_kernel(w_ref, b_ref, owi_ref, x_ref, o_ref, *,
                 K, KC, B, C, He, We, pe, V):
    """Whole-batch conv in flat (stride = We) coordinates.

    w_ref   : VMEM (K*K*KC, B*C, 128) f32 -- weight per (tap, out-chan),
              replicated over b (rows = b*C + c) and over 128 lanes.
    b_ref   : SMEM (KC,) f32              -- per-output-channel bias.
    owi_ref : VMEM (B*C, Nfp) int32       -- precomputed column index p % We.
    x_ref   : VMEM (B*C, Nfp) f32         -- image rows flattened on lanes.
    o_ref   : VMEM (B*KC, Nfp) f32        -- row = b*KC + kc, flat stride We.
    """
    R = B * C
    Nfp = V * 128

    xf = x_ref[...]                                   # loaded once, 2 vregs

    # ---- loop-invariant boundary masks (computed once) ---------------------
    p_idx = jax.lax.broadcasted_iota(jnp.int32, (R, Nfp), 1)
    ow_idx = owi_ref[...]

    row_mask, col_mask = [], []
    for dh in range(K):
        if pe - dh > 0:                    # top zero-pad rows
            row_mask.append(p_idx >= (pe - dh) * We)
        elif dh - pe > 0:                  # bottom zero-pad rows
            row_mask.append(p_idx < (He + pe - dh) * We)
        else:
            row_mask.append(None)
    for dw in range(K):
        if pe - dw > 0:                    # left zero-pad columns
            col_mask.append(ow_idx >= (pe - dw))
        elif dw - pe > 0:                  # right zero-pad columns
            col_mask.append(ow_idx < (We + pe - dw))
        else:
            col_mask.append(None)

    # Per-(out-channel, lane-chunk) accumulators stay in registers.
    accs = [[jnp.zeros((R, 128), jnp.float32) for _ in range(V)]
            for _ in range(KC)]

    # ---- fully unrolled tap loop: roll + mask + plain FMAs ------------------
    for dh in range(K):
        for dw in range(K):
            t = dh * K + dw
            s = (dh - pe) * We + (dw - pe)
            # rolled[p] = xf[(p + s) mod Nfp]; wrapped lanes are masked below.
            src = xf if s == 0 else pltpu.roll(xf, shift=(-s) % Nfp, axis=1)
            rm, cm = row_mask[dh], col_mask[dw]
            if rm is None and cm is None:
                m = None
            elif rm is None:
                m = cm
            elif cm is None:
                m = rm
            else:
                m = rm & cm
            tap = src if m is None else jnp.where(m, src, 0.0)
            for kc in range(KC):
                wtile = w_ref[t * KC + kc]            # aligned (R,128) load
                for j in range(V):
                    accs[kc][j] = (accs[kc][j]
                                   + tap[:, j * 128:(j + 1) * 128] * wtile)

    # ---- hoisted channel reduction + dense lane-wide stores -----------------
    for kc in range(KC):
        acc = accs[kc][0] if V == 1 else jnp.concatenate(accs[kc], axis=1)
        bk = b_ref[kc]
        for b in range(B):
            row = jnp.sum(acc[b * C:(b + 1) * C], axis=0, keepdims=True) + bk
            r0 = b * KC + kc
            o_ref[r0:r0 + 1, :] = row


def convolution_layer(x, w, bias, padding=0):
    """Pallas implementation of ConvolutionLayer.forward.

    x    : (B, C, H, W)   float32 (NCHW, square spatial dims)
    w    : (KC, C, K, K)  float32 (stacked ConvolutionN weights)
    bias : (KC,)          float32 (stacked ConvolutionN biases)
    returns (B, KC, OH, OW) float32
    """
    x = x.astype(jnp.float32)
    w = w.astype(jnp.float32)
    bias = jnp.reshape(bias.astype(jnp.float32), (-1,))

    B, C, H, W = x.shape
    KC, Cw, K, Kw = w.shape
    assert C == Cw and K == Kw and bias.shape[0] == KC

    # Fast path needs OH<=He and OW<=We (i.e. 2*pe <= K-1, covers valid/same
    # convs).  For exotic larger padding, pre-pad once and run with pe=0.
    if 2 * padding <= K - 1:
        pe, xe, He, We = padding, x, H, W
    else:
        xe = jnp.pad(x, ((0, 0), (0, 0),
                         (padding, padding), (padding, padding)))
        pe, He, We = 0, H + 2 * padding, W + 2 * padding
    OH = He + 2 * pe - K + 1
    OW = We + 2 * pe - K + 1
    assert OH >= 1 and OW >= 1

    R, Nf = B * C, He * We
    V = pl.cdiv(Nf, 128)
    Nfp = V * 128

    # Data path into the kernel: a single free row-major reshape.
    xw = xe.reshape(R, Nf)
    if Nfp != Nf:
        xw = jnp.pad(xw, ((0, 0), (0, Nfp - Nf)))

    # Parameter-side prep (hoistable / cacheable outside the step):
    # (KC,C,K,K) -> (K*K*KC, R=B*C, 128) pre-broadcast weight tiles.
    wt = jnp.transpose(w, (2, 3, 0, 1)).reshape(K * K * KC, C)
    wt = jnp.tile(wt, (1, B))                               # [:, b*C+c]
    w_b = jnp.broadcast_to(wt[:, :, None], (K * K * KC, R, 128))

    # Static column-index table (avoids in-kernel vector integer div/mod).
    ow_idx = jnp.asarray(
        np.tile((np.arange(Nfp, dtype=np.int32) % We)[None, :], (R, 1)))

    kernel = functools.partial(_conv_kernel, K=K, KC=KC, B=B, C=C,
                               He=He, We=We, pe=pe, V=V)

    # Single grid-less invocation: whole problem is ~100s of KiB of VMEM; a
    # serial grid would only add ~0.35us/step overhead at these sizes.
    out_flat = pl.pallas_call(
        kernel,
        out_shape=jax.ShapeDtypeStruct((B * KC, Nfp), jnp.float32),
        in_specs=[
            pl.BlockSpec(memory_space=pltpu.MemorySpace.VMEM),   # weights
            pl.BlockSpec(memory_space=pltpu.MemorySpace.SMEM),   # bias
            pl.BlockSpec(memory_space=pltpu.MemorySpace.VMEM),   # col index
            pl.BlockSpec(memory_space=pltpu.MemorySpace.VMEM),   # flat image
        ],
        out_specs=pl.BlockSpec(memory_space=pltpu.MemorySpace.VMEM),
    )(w_b, bias, ow_idx, xw)

    # Epilogue: free reshapes only in the common case (slices are no-ops when
    # Nfp==Nf and OH==He/OW==We, e.g. the padding=1, K=3 "same" conv).
    out = out_flat
    if Nfp != Nf:
        out = out[:, :Nf]
    out = out.reshape(B, KC, He, We)
    if OH != He or OW != We:
        out = out[:, :, :OH, :OW]
    return out


if __name__ == "__main__":
    # Module hyper-parameters (small, consistent with ConvolutionLayer).
    kernel_size = 3
    channel_in = 4
    kernel_count = 3
    kernel_depth = 4   # accepted but unused, exactly as in the PyTorch module
    padding = 1

    batch, H, W = 2, 16, 16

    key = jax.random.PRNGKey(0)
    kx, kw, kb = jax.random.split(key, 3)

    # Deterministic init mirroring:
    #   w    = randn(C, K, K) * (C*K)**-0.5 (one per ConvolutionN, stacked)
    #   bias = randn(1)       * (C*K)**-0.5
    scale = (channel_in * kernel_size) ** (-0.5)
    w = jax.random.normal(
        kw, (kernel_count, channel_in, kernel_size, kernel_size), jnp.float32
    ) * scale
    bias = jax.random.normal(kb, (kernel_count,), jnp.float32) * scale
    x = jax.random.normal(kx, (batch, channel_in, H, W), jnp.float32)

    conv = jax.jit(functools.partial(convolution_layer, padding=padding))
    out = jax.block_until_ready(conv(x, w, bias))

    # Pure-JAX reference (cross-correlation, NCHW / OIHW).
    ref = jax.lax.conv_general_dilated(
        x, w, window_strides=(1, 1),
        padding=((padding, padding), (padding, padding)),
        dimension_numbers=("NCHW", "OIHW", "NCHW"),
    ) + bias[None, :, None, None]

    assert out.shape == (batch, kernel_count,
                         H + 2 * padding - kernel_size + 1,
                         W + 2 * padding - kernel_size + 1)
    np.testing.assert_allclose(np.asarray(out), np.asarray(ref),
                               rtol=1e-5, atol=1e-5)

    print("KERNEL_OK")
</pallas_src>

<mosaic_0001>
module attributes {stable_mosaic.version = 11 : i64} {
  func.func @_conv_kernel(%arg0: memref<27x8x128xf32, #tpu.memory_space<vmem>>, %arg1: memref<3xf32, #tpu.memory_space<smem>>, %arg2: memref<8x256xi32, #tpu.memory_space<vmem>>, %arg3: memref<8x256xf32, #tpu.memory_space<vmem>>, %arg4: memref<6x256xf32, #tpu.memory_space<vmem>>) attributes {dimension_semantics = [], scalar_prefetch = 0 : i64, scratch_operands = 0 : i64, tpu.core_type = #tpu.core_type<tc>} {
    %c0 = arith.constant 0 : index
    %c0_0 = arith.constant 0 : index
    %0 = vector.load %arg3[%c0, %c0_0] : memref<8x256xf32, #tpu.memory_space<vmem>>, vector<8x256xf32>
    %1 = tpu.iota {dimensions = array<i32: 1>} : vector<8x256xi32>
    %c0_1 = arith.constant 0 : index
    %c0_2 = arith.constant 0 : index
    %2 = vector.load %arg2[%c0_1, %c0_2] : memref<8x256xi32, #tpu.memory_space<vmem>>, vector<8x256xi32>
    %c16_i32 = arith.constant 16 : i32
    %3 = vector.broadcast %c16_i32 : i32 to vector<8x256xi32>
    %4 = arith.cmpi sge, %1, %3 : vector<8x256xi32>
    %c240_i32 = arith.constant 240 : i32
    %5 = vector.broadcast %c240_i32 : i32 to vector<8x256xi32>
    %6 = arith.cmpi slt, %1, %5 : vector<8x256xi32>
    %c1_i32 = arith.constant 1 : i32
    %7 = vector.broadcast %c1_i32 : i32 to vector<8x256xi32>
    %8 = arith.cmpi sge, %2, %7 : vector<8x256xi32>
    %c15_i32 = arith.constant 15 : i32
    %9 = vector.broadcast %c15_i32 : i32 to vector<8x256xi32>
    %10 = arith.cmpi slt, %2, %9 : vector<8x256xi32>
    %cst = arith.constant 0.000000e+00 : f32
    %11 = vector.broadcast %cst : f32 to vector<8x128xf32>
    %cst_3 = arith.constant 0.000000e+00 : f32
    %12 = vector.broadcast %cst_3 : f32 to vector<8x128xf32>
    %cst_4 = arith.constant 0.000000e+00 : f32
    %13 = vector.broadcast %cst_4 : f32 to vector<8x128xf32>
    %cst_5 = arith.constant 0.000000e+00 : f32
    %14 = vector.broadcast %cst_5 : f32 to vector<8x128xf32>
    %cst_6 = arith.constant 0.000000e+00 : f32
    %15 = vector.broadcast %cst_6 : f32 to vector<8x128xf32>
    %cst_7 = arith.constant 0.000000e+00 : f32
    %16 = vector.broadcast %cst_7 : f32 to vector<8x128xf32>
    %c17_i32 = arith.constant 17 : i32
    %17 = tpu.dynamic_rotate %0 by %c17_i32 dim 1 : vector<8x256xf32>, i32 -> vector<8x256xf32>
    %18 = arith.andi %4, %8 : vector<8x256xi1>
    %cst_8 = arith.constant 0.000000e+00 : f32
    %19 = vector.broadcast %cst_8 : f32 to vector<8x256xf32>
    %20 = arith.select %18, %17, %19 : vector<8x256xi1>, vector<8x256xf32>
    %c0_9 = arith.constant 0 : index
    %c0_10 = arith.constant 0 : index
    %c0_11 = arith.constant 0 : index
    %21 = vector.load %arg0[%c0_9, %c0_10, %c0_11] : memref<27x8x128xf32, #tpu.memory_space<vmem>>, vector<1x8x128xf32>
    %22 = vector.shape_cast %21 : vector<1x8x128xf32> to vector<8x128xf32>
    %23 = vector.extract_strided_slice %20 {offsets = [0, 0], sizes = [8, 128], strides = [1, 1]} : vector<8x256xf32> to vector<8x128xf32>
    %24 = arith.mulf %23, %22 : vector<8x128xf32>
    %25 = arith.addf %11, %24 : vector<8x128xf32>
    %26 = vector.extract_strided_slice %20 {offsets = [0, 128], sizes = [8, 128], strides = [1, 1]} : vector<8x256xf32> to vector<8x128xf32>
    %27 = arith.mulf %26, %22 : vector<8x128xf32>
    %28 = arith.addf %12, %27 : vector<8x128xf32>
    %c1 = arith.constant 1 : index
    %c0_12 = arith.constant 0 : index
    %c0_13 = arith.constant 0 : index
    %29 = vector.load %arg0[%c1, %c0_12, %c0_13] : memref<27x8x128xf32, #tpu.memory_space<vmem>>, vector<1x8x128xf32>
    %30 = vector.shape_cast %29 : vector<1x8x128xf32> to vector<8x128xf32>
    %31 = vector.extract_strided_slice %20 {offsets = [0, 0], sizes = [8, 128], strides = [1, 1]} : vector<8x256xf32> to vector<8x128xf32>
    %32 = arith.mulf %31, %30 : vector<8x128xf32>
    %33 = arith.addf %13, %32 : vector<8x128xf32>
    %34 = vector.extract_strided_slice %20 {offsets = [0, 128], sizes = [8, 128], strides = [1, 1]} : vector<8x256xf32> to vector<8x128xf32>
    %35 = arith.mulf %34, %30 : vector<8x128xf32>
    %36 = arith.addf %14, %35 : vector<8x128xf32>
    %c2 = arith.constant 2 : index
    %c0_14 = arith.constant 0 : index
    %c0_15 = arith.constant 0 : index
    %37 = vector.load %arg0[%c2, %c0_14, %c0_15] : memref<27x8x128xf32, #tpu.memory_space<vmem>>, vector<1x8x128xf32>
    %38 = vector.shape_cast %37 : vector<1x8x128xf32> to vector<8x128xf32>
    %39 = vector.extract_strided_slice %20 {offsets = [0, 0], sizes = [8, 128], strides = [1, 1]} : vector<8x256xf32> to vector<8x128xf32>
    %40 = arith.mulf %39, %38 : vector<8x128xf32>
    %41 = arith.addf %15, %40 : vector<8x128xf32>
    %42 = vector.extract_strided_slice %20 {offsets = [0, 128], sizes = [8, 128], strides = [1, 1]} : vector<8x256xf32> to vector<8x128xf32>
    %43 = arith.mulf %42, %38 : vector<8x128xf32>
    %44 = arith.addf %16, %43 : vector<8x128xf32>
    %c16_i32_16 = arith.constant 16 : i32
    %45 = tpu.dynamic_rotate %0 by %c16_i32_16 dim 1 : vector<8x256xf32>, i32 -> vector<8x256xf32>
    %cst_17 = arith.constant 0.000000e+00 : f32
    %46 = vector.broadcast %cst_17 : f32 to vector<8x256xf32>
    %47 = arith.select %4, %45, %46 : vector<8x256xi1>, vector<8x256xf32>
    %c3 = arith.constant 3 : index
    %c0_18 = arith.constant 0 : index
    %c0_19 = arith.constant 0 : index
    %48 = vector.load %arg0[%c3, %c0_18, %c0_19] : memref<27x8x128xf32, #tpu.memory_space<vmem>>, vector<1x8x128xf32>
    %49 = vector.shape_cast %48 : vector<1x8x128xf32> to vector<8x128xf32>
    %50 = vector.extract_strided_slice %47 {offsets = [0, 0], sizes = [8, 128], strides = [1, 1]} : vector<8x256xf32> to vector<8x128xf32>
    %51 = arith.mulf %50, %49 : vector<8x128xf32>
    %52 = arith.addf %25, %51 : vector<8x128xf32>
    %53 = vector.extract_strided_slice %47 {offsets = [0, 128], sizes = [8, 128], strides = [1, 1]} : vector<8x256xf32> to vector<8x128xf32>
    %54 = arith.mulf %53, %49 : vector<8x128xf32>
    %55 = arith.addf %28, %54 : vector<8x128xf32>
    %c4 = arith.constant 4 : index
    %c0_20 = arith.constant 0 : index
    %c0_21 = arith.constant 0 : index
    %56 = vector.load %arg0[%c4, %c0_20, %c0_21] : memref<27x8x128xf32, #tpu.memory_space<vmem>>, vector<1x8x128xf32>
    %57 = vector.shape_cast %56 : vector<1x8x128xf32> to vector<8x128xf32>
    %58 = vector.extract_strided_slice %47 {offsets = [0, 0], sizes = [8, 128], strides = [1, 1]} : vector<8x256xf32> to vector<8x128xf32>
    %59 = arith.mulf %58, %57 : vector<8x128xf32>
    %60 = arith.addf %33, %59 : vector<8x128xf32>
    %61 = vector.extract_strided_slice %47 {offsets = [0, 128], sizes = [8, 128], strides = [1, 1]} : vector<8x256xf32> to vector<8x128xf32>
    %62 = arith.mulf %61, %57 : vector<8x128xf32>
    %63 = arith.addf %36, %62 : vector<8x128xf32>
    %c5 = arith.constant 5 : index
    %c0_22 = arith.constant 0 : index
    %c0_23 = arith.constant 0 : index
    %64 = vector.load %arg0[%c5, %c0_22, %c0_23] : memref<27x8x128xf32, #tpu.memory_space<vmem>>, vector<1x8x128xf32>
    %65 = vector.shape_cast %64 : vector<1x8x128xf32> to vector<8x128xf32>
    %66 = vector.extract_strided_slice %47 {offsets = [0, 0], sizes = [8, 128], strides = [1, 1]} : vector<8x256xf32> to vector<8x128xf32>
    %67 = arith.mulf %66, %65 : vector<8x128xf32>
    %68 = arith.addf %41, %67 : vector<8x128xf32>
    %69 = vector.extract_strided_slice %47 {offsets = [0, 128], sizes = [8, 128], strides = [1, 1]} : vector<8x256xf32> to vector<8x128xf32>
    %70 = arith.mulf %69, %65 : vector<8x128xf32>
    %71 = arith.addf %44, %70 : vector<8x128xf32>
    %c15_i32_24 = arith.constant 15 : i32
    %72 = tpu.dynamic_rotate %0 by %c15_i32_24 dim 1 : vector<8x256xf32>, i32 -> vector<8x256xf32>
    %73 = arith.andi %4, %10 : vector<8x256xi1>
    %cst_25 = arith.constant 0.000000e+00 : f32
    %74 = vector.broadcast %cst_25 : f32 to vector<8x256xf32>
    %75 = arith.select %73, %72, %74 : vector<8x256xi1>, vector<8x256xf32>
    %c6 = arith.constant 6 : index
    %c0_26 = arith.constant 0 : index
    %c0_27 = arith.constant 0 : index
    %76 = vector.load %arg0[%c6, %c0_26, %c0_27] : memref<27x8x128xf32, #tpu.memory_space<vmem>>, vector<1x8x128xf32>
    %77 = vector.shape_cast %76 : vector<1x8x128xf32> to vector<8x128xf32>
    %78 = vector.extract_strided_slice %75 {offsets = [0, 0], sizes = [8, 128], strides = [1, 1]} : vector<8x256xf32> to vector<8x128xf32>
    %79 = arith.mulf %78, %77 : vector<8x128xf32>
    %80 = arith.addf %52, %79 : vector<8x128xf32>
    %81 = vector.extract_strided_slice %75 {offsets = [0, 128], sizes = [8, 128], strides = [1, 1]} : vector<8x256xf32> to vector<8x128xf32>
    %82 = arith.mulf %81, %77 : vector<8x128xf32>
    %83 = arith.addf %55, %82 : vector<8x128xf32>
    %c7 = arith.constant 7 : index
    %c0_28 = arith.constant 0 : index
    %c0_29 = arith.constant 0 : index
    %84 = vector.load %arg0[%c7, %c0_28, %c0_29] : memref<27x8x128xf32, #tpu.memory_space<vmem>>, vector<1x8x128xf32>
    %85 = vector.shape_cast %84 : vector<1x8x128xf32> to vector<8x128xf32>
    %86 = vector.extract_strided_slice %75 {offsets = [0, 0], sizes = [8, 128], strides = [1, 1]} : vector<8x256xf32> to vector<8x128xf32>
    %87 = arith.mulf %86, %85 : vector<8x128xf32>
    %88 = arith.addf %60, %87 : vector<8x128xf32>
    %89 = vector.extract_strided_slice %75 {offsets = [0, 128], sizes = [8, 128], strides = [1, 1]} : vector<8x256xf32> to vector<8x128xf32>
    %90 = arith.mulf %89, %85 : vector<8x128xf32>
    %91 = arith.addf %63, %90 : vector<8x128xf32>
    %c8 = arith.constant 8 : index
    %c0_30 = arith.constant 0 : index
    %c0_31 = arith.constant 0 : index
    %92 = vector.load %arg0[%c8, %c0_30, %c0_31] : memref<27x8x128xf32, #tpu.memory_space<vmem>>, vector<1x8x128xf32>
    %93 = vector.shape_cast %92 : vector<1x8x128xf32> to vector<8x128xf32>
    %94 = vector.extract_strided_slice %75 {offsets = [0, 0], sizes = [8, 128], strides = [1, 1]} : vector<8x256xf32> to vector<8x128xf32>
    %95 = arith.mulf %94, %93 : vector<8x128xf32>
    %96 = arith.addf %68, %95 : vector<8x128xf32>
    %97 = vector.extract_strided_slice %75 {offsets = [0, 128], sizes = [8, 128], strides = [1, 1]} : vector<8x256xf32> to vector<8x128xf32>
    %98 = arith.mulf %97, %93 : vector<8x128xf32>
    %99 = arith.addf %71, %98 : vector<8x128xf32>
    %c1_i32_32 = arith.constant 1 : i32
    %100 = tpu.dynamic_rotate %0 by %c1_i32_32 dim 1 : vector<8x256xf32>, i32 -> vector<8x256xf32>
    %cst_33 = arith.constant 0.000000e+00 : f32
    %101 = vector.broadcast %cst_33 : f32 to vector<8x256xf32>
    %102 = arith.select %8, %100, %101 : vector<8x256xi1>, vector<8x256xf32>
    %c9 = arith.constant 9 : index
    %c0_34 = arith.constant 0 : index
    %c0_35 = arith.constant 0 : index
    %103 = vector.load %arg0[%c9, %c0_34, %c0_35] : memref<27x8x128xf32, #tpu.memory_space<vmem>>, vector<1x8x128xf32>
    %104 = vector.shape_cast %103 : vector<1x8x128xf32> to vector<8x128xf32>
    %105 = vector.extract_strided_slice %102 {offsets = [0, 0], sizes = [8, 128], strides = [1, 1]} : vector<8x256xf32> to vector<8x128xf32>
    %106 = arith.mulf %105, %104 : vector<8x128xf32>
    %107 = arith.addf %80, %106 : vector<8x128xf32>
    %108 = vector.extract_strided_slice %102 {offsets = [0, 128], sizes = [8, 128], strides = [1, 1]} : vector<8x256xf32> to vector<8x128xf32>
    %109 = arith.mulf %108, %104 : vector<8x128xf32>
    %110 = arith.addf %83, %109 : vector<8x128xf32>
    %c10 = arith.constant 10 : index
    %c0_36 = arith.constant 0 : index
    %c0_37 = arith.constant 0 : index
    %111 = vector.load %arg0[%c10, %c0_36, %c0_37] : memref<27x8x128xf32, #tpu.memory_space<vmem>>, vector<1x8x128xf32>
    %112 = vector.shape_cast %111 : vector<1x8x128xf32> to vector<8x128xf32>
    %113 = vector.extract_strided_slice %102 {offsets = [0, 0], sizes = [8, 128], strides = [1, 1]} : vector<8x256xf32> to vector<8x128xf32>
    %114 = arith.mulf %113, %112 : vector<8x128xf32>
    %115 = arith.addf %88, %114 : vector<8x128xf32>
    %116 = vector.extract_strided_slice %102 {offsets = [0, 128], sizes = [8, 128], strides = [1, 1]} : vector<8x256xf32> to vector<8x128xf32>
    %117 = arith.mulf %116, %112 : vector<8x128xf32>
    %118 = arith.addf %91, %117 : vector<8x128xf32>
    %c11 = arith.constant 11 : index
    %c0_38 = arith.constant 0 : index
    %c0_39 = arith.constant 0 : index
    %119 = vector.load %arg0[%c11, %c0_38, %c0_39] : memref<27x8x128xf32, #tpu.memory_space<vmem>>, vector<1x8x128xf32>
    %120 = vector.shape_cast %119 : vector<1x8x128xf32> to vector<8x128xf32>
    %121 = vector.extract_strided_slice %102 {offsets = [0, 0], sizes = [8, 128], strides = [1, 1]} : vector<8x256xf32> to vector<8x128xf32>
    %122 = arith.mulf %121, %120 : vector<8x128xf32>
    %123 = arith.addf %96, %122 : vector<8x128xf32>
    %124 = vector.extract_strided_slice %102 {offsets = [0, 128], sizes = [8, 128], strides = [1, 1]} : vector<8x256xf32> to vector<8x128xf32>
    %125 = arith.mulf %124, %120 : vector<8x128xf32>
    %126 = arith.addf %99, %125 : vector<8x128xf32>
    %c12 = arith.constant 12 : index
    %c0_40 = arith.constant 0 : index
    %c0_41 = arith.constant 0 : index
    %127 = vector.load %arg0[%c12, %c0_40, %c0_41] : memref<27x8x128xf32, #tpu.memory_space<vmem>>, vector<1x8x128xf32>
    %128 = vector.shape_cast %127 : vector<1x8x128xf32> to vector<8x128xf32>
    %129 = vector.extract_strided_slice %0 {offsets = [0, 0], sizes = [8, 128], strides = [1, 1]} : vector<8x256xf32> to vector<8x128xf32>
    %130 = arith.mulf %129, %128 : vector<8x128xf32>
    %131 = arith.addf %107, %130 : vector<8x128xf32>
    %132 = vector.extract_strided_slice %0 {offsets = [0, 128], sizes = [8, 128], strides = [1, 1]} : vector<8x256xf32> to vector<8x128xf32>
    %133 = arith.mulf %132, %128 : vector<8x128xf32>
    %134 = arith.addf %110, %133 : vector<8x128xf32>
    %c13 = arith.constant 13 : index
    %c0_42 = arith.constant 0 : index
    %c0_43 = arith.constant 0 : index
    %135 = vector.load %arg0[%c13, %c0_42, %c0_43] : memref<27x8x128xf32, #tpu.memory_space<vmem>>, vector<1x8x128xf32>
    %136 = vector.shape_cast %135 : vector<1x8x128xf32> to vector<8x128xf32>
    %137 = vector.extract_strided_slice %0 {offsets = [0, 0], sizes = [8, 128], strides = [1, 1]} : vector<8x256xf32> to vector<8x128xf32>
    %138 = arith.mulf %137, %136 : vector<8x128xf32>
    %139 = arith.addf %115, %138 : vector<8x128xf32>
    %140 = vector.extract_strided_slice %0 {offsets = [0, 128], sizes = [8, 128], strides = [1, 1]} : vector<8x256xf32> to vector<8x128xf32>
    %141 = arith.mulf %140, %136 : vector<8x128xf32>
    %142 = arith.addf %118, %141 : vector<8x128xf32>
    %c14 = arith.constant 14 : index
    %c0_44 = arith.constant 0 : index
    %c0_45 = arith.constant 0 : index
    %143 = vector.load %arg0[%c14, %c0_44, %c0_45] : memref<27x8x128xf32, #tpu.memory_space<vmem>>, vector<1x8x128xf32>
    %144 = vector.shape_cast %143 : vector<1x8x128xf32> to vector<8x128xf32>
    %145 = vector.extract_strided_slice %0 {offsets = [0, 0], sizes = [8, 128], strides = [1, 1]} : vector<8x256xf32> to vector<8x128xf32>
    %146 = arith.mulf %145, %144 : vector<8x128xf32>
    %147 = arith.addf %123, %146 : vector<8x128xf32>
    %148 = vector.extract_strided_slice %0 {offsets = [0, 128], sizes = [8, 128], strides = [1, 1]} : vector<8x256xf32> to vector<8x128xf32>
    %149 = arith.mulf %148, %144 : vector<8x128xf32>
    %150 = arith.addf %126, %149 : vector<8x128xf32>
    %c255_i32 = arith.constant 255 : i32
    %151 = tpu.dynamic_rotate %0 by %c255_i32 dim 1 : vector<8x256xf32>, i32 -> vector<8x256xf32>
    %cst_46 = arith.constant 0.000000e+00 : f32
    %152 = vector.broadcast %cst_46 : f32 to vector<8x256xf32>
    %153 = arith.select %10, %151, %152 : vector<8x256xi1>, vector<8x256xf32>
    %c15 = arith.constant 15 : index
    %c0_47 = arith.constant 0 : index
    %c0_48 = arith.constant 0 : index
    %154 = vector.load %arg0[%c15, %c0_47, %c0_48] : memref<27x8x128xf32, #tpu.memory_space<vmem>>, vector<1x8x128xf32>
    %155 = vector.shape_cast %154 : vector<1x8x128xf32> to vector<8x128xf32>
    %156 = vector.extract_strided_slice %153 {offsets = [0, 0], sizes = [8, 128], strides = [1, 1]} : vector<8x256xf32> to vector<8x128xf32>
    %157 = arith.mulf %156, %155 : vector<8x128xf32>
    %158 = arith.addf %131, %157 : vector<8x128xf32>
    %159 = vector.extract_strided_slice %153 {offsets = [0, 128], sizes = [8, 128], strides = [1, 1]} : vector<8x256xf32> to vector<8x128xf32>
    %160 = arith.mulf %159, %155 : vector<8x128xf32>
    %161 = arith.addf %134, %160 : vector<8x128xf32>
    %c16 = arith.constant 16 : index
    %c0_49 = arith.constant 0 : index
    %c0_50 = arith.constant 0 : index
    %162 = vector.load %arg0[%c16, %c0_49, %c0_50] : memref<27x8x128xf32, #tpu.memory_space<vmem>>, vector<1x8x128xf32>
    %163 = vector.shape_cast %162 : vector<1x8x128xf32> to vector<8x128xf32>
    %164 = vector.extract_strided_slice %153 {offsets = [0, 0], sizes = [8, 128], strides = [1, 1]} : vector<8x256xf32> to vector<8x128xf32>
    %165 = arith.mulf %164, %163 : vector<8x128xf32>
    %166 = arith.addf %139, %165 : vector<8x128xf32>
    %167 = vector.extract_strided_slice %153 {offsets = [0, 128], sizes = [8, 128], strides = [1, 1]} : vector<8x256xf32> to vector<8x128xf32>
    %168 = arith.mulf %167, %163 : vector<8x128xf32>
    %169 = arith.addf %142, %168 : vector<8x128xf32>
    %c17 = arith.constant 17 : index
    %c0_51 = arith.constant 0 : index
    %c0_52 = arith.constant 0 : index
    %170 = vector.load %arg0[%c17, %c0_51, %c0_52] : memref<27x8x128xf32, #tpu.memory_space<vmem>>, vector<1x8x128xf32>
    %171 = vector.shape_cast %170 : vector<1x8x128xf32> to vector<8x128xf32>
    %172 = vector.extract_strided_slice %153 {offsets = [0, 0], sizes = [8, 128], strides = [1, 1]} : vector<8x256xf32> to vector<8x128xf32>
    %173 = arith.mulf %172, %171 : vector<8x128xf32>
    %174 = arith.addf %147, %173 : vector<8x128xf32>
    %175 = vector.extract_strided_slice %153 {offsets = [0, 128], sizes = [8, 128], strides = [1, 1]} : vector<8x256xf32> to vector<8x128xf32>
    %176 = arith.mulf %175, %171 : vector<8x128xf32>
    %177 = arith.addf %150, %176 : vector<8x128xf32>
    %c241_i32 = arith.constant 241 : i32
    %178 = tpu.dynamic_rotate %0 by %c241_i32 dim 1 : vector<8x256xf32>, i32 -> vector<8x256xf32>
    %179 = arith.andi %6, %8 : vector<8x256xi1>
    %cst_53 = arith.constant 0.000000e+00 : f32
    %180 = vector.broadcast %cst_53 : f32 to vector<8x256xf32>
    %181 = arith.select %179, %178, %180 : vector<8x256xi1>, vector<8x256xf32>
    %c18 = arith.constant 18 : index
    %c0_54 = arith.constant 0 : index
    %c0_55 = arith.constant 0 : index
    %182 = vector.load %arg0[%c18, %c0_54, %c0_55] : memref<27x8x128xf32, #tpu.memory_space<vmem>>, vector<1x8x128xf32>
    %183 = vector.shape_cast %182 : vector<1x8x128xf32> to vector<8x128xf32>
    %184 = vector.extract_strided_slice %181 {offsets = [0, 0], sizes = [8, 128], strides = [1, 1]} : vector<8x256xf32> to vector<8x128xf32>
    %185 = arith.mulf %184, %183 : vector<8x128xf32>
    %186 = arith.addf %158, %185 : vector<8x128xf32>
    %187 = vector.extract_strided_slice %181 {offsets = [0, 128], sizes = [8, 128], strides = [1, 1]} : vector<8x256xf32> to vector<8x128xf32>
    %188 = arith.mulf %187, %183 : vector<8x128xf32>
    %189 = arith.addf %161, %188 : vector<8x128xf32>
    %c19 = arith.constant 19 : index
    %c0_56 = arith.constant 0 : index
    %c0_57 = arith.constant 0 : index
    %190 = vector.load %arg0[%c19, %c0_56, %c0_57] : memref<27x8x128xf32, #tpu.memory_space<vmem>>, vector<1x8x128xf32>
    %191 = vector.shape_cast %190 : vector<1x8x128xf32> to vector<8x128xf32>
    %192 = vector.extract_strided_slice %181 {offsets = [0, 0], sizes = [8, 128], strides = [1, 1]} : vector<8x256xf32> to vector<8x128xf32>
    %193 = arith.mulf %192, %191 : vector<8x128xf32>
    %194 = arith.addf %166, %193 : vector<8x128xf32>
    %195 = vector.extract_strided_slice %181 {offsets = [0, 128], sizes = [8, 128], strides = [1, 1]} : vector<8x256xf32> to vector<8x128xf32>
    %196 = arith.mulf %195, %191 : vector<8x128xf32>
    %197 = arith.addf %169, %196 : vector<8x128xf32>
    %c20 = arith.constant 20 : index
    %c0_58 = arith.constant 0 : index
    %c0_59 = arith.constant 0 : index
    %198 = vector.load %arg0[%c20, %c0_58, %c0_59] : memref<27x8x128xf32, #tpu.memory_space<vmem>>, vector<1x8x128xf32>
    %199 = vector.shape_cast %198 : vector<1x8x128xf32> to vector<8x128xf32>
    %200 = vector.extract_strided_slice %181 {offsets = [0, 0], sizes = [8, 128], strides = [1, 1]} : vector<8x256xf32> to vector<8x128xf32>
    %201 = arith.mulf %200, %199 : vector<8x128xf32>
    %202 = arith.addf %174, %201 : vector<8x128xf32>
    %203 = vector.extract_strided_slice %181 {offsets = [0, 128], sizes = [8, 128], strides = [1, 1]} : vector<8x256xf32> to vector<8x128xf32>
    %204 = arith.mulf %203, %199 : vector<8x128xf32>
    %205 = arith.addf %177, %204 : vector<8x128xf32>
    %c240_i32_60 = arith.constant 240 : i32
    %206 = tpu.dynamic_rotate %0 by %c240_i32_60 dim 1 : vector<8x256xf32>, i32 -> vector<8x256xf32>
    %cst_61 = arith.constant 0.000000e+00 : f32
    %207 = vector.broadcast %cst_61 : f32 to vector<8x256xf32>
    %208 = arith.select %6, %206, %207 : vector<8x256xi1>, vector<8x256xf32>
    %c21 = arith.constant 21 : index
    %c0_62 = arith.constant 0 : index
    %c0_63 = arith.constant 0 : index
    %209 = vector.load %arg0[%c21, %c0_62, %c0_63] : memref<27x8x128xf32, #tpu.memory_space<vmem>>, vector<1x8x128xf32>
    %210 = vector.shape_cast %209 : vector<1x8x128xf32> to vector<8x128xf32>
    %211 = vector.extract_strided_slice %208 {offsets = [0, 0], sizes = [8, 128], strides = [1, 1]} : vector<8x256xf32> to vector<8x128xf32>
    %212 = arith.mulf %211, %210 : vector<8x128xf32>
    %213 = arith.addf %186, %212 : vector<8x128xf32>
    %214 = vector.extract_strided_slice %208 {offsets = [0, 128], sizes = [8, 128], strides = [1, 1]} : vector<8x256xf32> to vector<8x128xf32>
    %215 = arith.mulf %214, %210 : vector<8x128xf32>
    %216 = arith.addf %189, %215 : vector<8x128xf32>
    %c22 = arith.constant 22 : index
    %c0_64 = arith.constant 0 : index
    %c0_65 = arith.constant 0 : index
    %217 = vector.load %arg0[%c22, %c0_64, %c0_65] : memref<27x8x128xf32, #tpu.memory_space<vmem>>, vector<1x8x128xf32>
    %218 = vector.shape_cast %217 : vector<1x8x128xf32> to vector<8x128xf32>
    %219 = vector.extract_strided_slice %208 {offsets = [0, 0], sizes = [8, 128], strides = [1, 1]} : vector<8x256xf32> to vector<8x128xf32>
    %220 = arith.mulf %219, %218 : vector<8x128xf32>
    %221 = arith.addf %194, %220 : vector<8x128xf32>
    %222 = vector.extract_strided_slice %208 {offsets = [0, 128], sizes = [8, 128], strides = [1, 1]} : vector<8x256xf32> to vector<8x128xf32>
    %223 = arith.mulf %222, %218 : vector<8x128xf32>
    %224 = arith.addf %197, %223 : vector<8x128xf32>
    %c23 = arith.constant 23 : index
    %c0_66 = arith.constant 0 : index
    %c0_67 = arith.constant 0 : index
    %225 = vector.load %arg0[%c23, %c0_66, %c0_67] : memref<27x8x128xf32, #tpu.memory_space<vmem>>, vector<1x8x128xf32>
    %226 = vector.shape_cast %225 : vector<1x8x128xf32> to vector<8x128xf32>
    %227 = vector.extract_strided_slice %208 {offsets = [0, 0], sizes = [8, 128], strides = [1, 1]} : vector<8x256xf32> to vector<8x128xf32>
    %228 = arith.mulf %227, %226 : vector<8x128xf32>
    %229 = arith.addf %202, %228 : vector<8x128xf32>
    %230 = vector.extract_strided_slice %208 {offsets = [0, 128], sizes = [8, 128], strides = [1, 1]} : vector<8x256xf32> to vector<8x128xf32>
    %231 = arith.mulf %230, %226 : vector<8x128xf32>
    %232 = arith.addf %205, %231 : vector<8x128xf32>
    %c239_i32 = arith.constant 239 : i32
    %233 = tpu.dynamic_rotate %0 by %c239_i32 dim 1 : vector<8x256xf32>, i32 -> vector<8x256xf32>
    %234 = arith.andi %6, %10 : vector<8x256xi1>
    %cst_68 = arith.constant 0.000000e+00 : f32
    %235 = vector.broadcast %cst_68 : f32 to vector<8x256xf32>
    %236 = arith.select %234, %233, %235 : vector<8x256xi1>, vector<8x256xf32>
    %c24 = arith.constant 24 : index
    %c0_69 = arith.constant 0 : index
    %c0_70 = arith.constant 0 : index
    %237 = vector.load %arg0[%c24, %c0_69, %c0_70] : memref<27x8x128xf32, #tpu.memory_space<vmem>>, vector<1x8x128xf32>
    %238 = vector.shape_cast %237 : vector<1x8x128xf32> to vector<8x128xf32>
    %239 = vector.extract_strided_slice %236 {offsets = [0, 0], sizes = [8, 128], strides = [1, 1]} : vector<8x256xf32> to vector<8x128xf32>
    %240 = arith.mulf %239, %238 : vector<8x128xf32>
    %241 = arith.addf %213, %240 : vector<8x128xf32>
    %242 = vector.extract_strided_slice %236 {offsets = [0, 128], sizes = [8, 128], strides = [1, 1]} : vector<8x256xf32> to vector<8x128xf32>
    %243 = arith.mulf %242, %238 : vector<8x128xf32>
    %244 = arith.addf %216, %243 : vector<8x128xf32>
    %c25 = arith.constant 25 : index
    %c0_71 = arith.constant 0 : index
    %c0_72 = arith.constant 0 : index
    %245 = vector.load %arg0[%c25, %c0_71, %c0_72] : memref<27x8x128xf32, #tpu.memory_space<vmem>>, vector<1x8x128xf32>
    %246 = vector.shape_cast %245 : vector<1x8x128xf32> to vector<8x128xf32>
    %247 = vector.extract_strided_slice %236 {offsets = [0, 0], sizes = [8, 128], strides = [1, 1]} : vector<8x256xf32> to vector<8x128xf32>
    %248 = arith.mulf %247, %246 : vector<8x128xf32>
    %249 = arith.addf %221, %248 : vector<8x128xf32>
    %250 = vector.extract_strided_slice %236 {offsets = [0, 128], sizes = [8, 128], strides = [1, 1]} : vector<8x256xf32> to vector<8x128xf32>
    %251 = arith.mulf %250, %246 : vector<8x128xf32>
    %252 = arith.addf %224, %251 : vector<8x128xf32>
    %c26 = arith.constant 26 : index
    %c0_73 = arith.constant 0 : index
    %c0_74 = arith.constant 0 : index
    %253 = vector.load %arg0[%c26, %c0_73, %c0_74] : memref<27x8x128xf32, #tpu.memory_space<vmem>>, vector<1x8x128xf32>
    %254 = vector.shape_cast %253 : vector<1x8x128xf32> to vector<8x128xf32>
    %255 = vector.extract_strided_slice %236 {offsets = [0, 0], sizes = [8, 128], strides = [1, 1]} : vector<8x256xf32> to vector<8x128xf32>
    %256 = arith.mulf %255, %254 : vector<8x128xf32>
    %257 = arith.addf %229, %256 : vector<8x128xf32>
    %258 = vector.extract_strided_slice %236 {offsets = [0, 128], sizes = [8, 128], strides = [1, 1]} : vector<8x256xf32> to vector<8x128xf32>
    %259 = arith.mulf %258, %254 : vector<8x128xf32>
    %260 = arith.addf %232, %259 : vector<8x128xf32>
    %261 = tpu.concatenate %241, %244 in 1 : vector<8x128xf32>, vector<8x128xf32> -> vector<8x256xf32>
    %c0_75 = arith.constant 0 : index
    %262 = memref.load %arg1[%c0_75] : memref<3xf32, #tpu.memory_space<smem>>
    %263 = vector.extract_strided_slice %261 {offsets = [0, 0], sizes = [4, 256], strides = [1, 1]} : vector<8x256xf32> to vector<4x256xf32>
    %cst_76 = arith.constant dense<0.000000e+00> : vector<256xf32>
    %264 = vector.multi_reduction <add>, %263, %cst_76 [0] : vector<4x256xf32> to vector<256xf32>
    %265 = vector.shape_cast %264 : vector<256xf32> to vector<1x256xf32>
    %266 = vector.broadcast %262 : f32 to vector<1x256xf32>
    %267 = arith.addf %265, %266 : vector<1x256xf32>
    %c0_77 = arith.constant 0 : index
    %c0_78 = arith.constant 0 : index
    %268 = vector.load %arg4[%c0_77, %c0_78] : memref<6x256xf32, #tpu.memory_space<vmem>>, vector<1x256xf32>
    tpu.vector_store %arg4[%c0_77, %c0_78], %267 {strides = array<i32>} : memref<6x256xf32, #tpu.memory_space<vmem>>, vector<1x256xf32>,
    %269 = vector.extract_strided_slice %261 {offsets = [4, 0], sizes = [4, 256], strides = [1, 1]} : vector<8x256xf32> to vector<4x256xf32>
    %cst_79 = arith.constant dense<0.000000e+00> : vector<256xf32>
    %270 = vector.multi_reduction <add>, %269, %cst_79 [0] : vector<4x256xf32> to vector<256xf32>
    %271 = vector.shape_cast %270 : vector<256xf32> to vector<1x256xf32>
    %272 = vector.broadcast %262 : f32 to vector<1x256xf32>
    %273 = arith.addf %271, %272 : vector<1x256xf32>
    %c3_80 = arith.constant 3 : index
    %c0_81 = arith.constant 0 : index
    %274 = vector.load %arg4[%c3_80, %c0_81] : memref<6x256xf32, #tpu.memory_space<vmem>>, vector<1x256xf32>
    tpu.vector_store %arg4[%c3_80, %c0_81], %273 {strides = array<i32>} : memref<6x256xf32, #tpu.memory_space<vmem>>, vector<1x256xf32>,
    %275 = tpu.concatenate %249, %252 in 1 : vector<8x128xf32>, vector<8x128xf32> -> vector<8x256xf32>
    %c1_82 = arith.constant 1 : index
    %276 = memref.load %arg1[%c1_82] : memref<3xf32, #tpu.memory_space<smem>>
    %277 = vector.extract_strided_slice %275 {offsets = [0, 0], sizes = [4, 256], strides = [1, 1]} : vector<8x256xf32> to vector<4x256xf32>
    %cst_83 = arith.constant dense<0.000000e+00> : vector<256xf32>
    %278 = vector.multi_reduction <add>, %277, %cst_83 [0] : vector<4x256xf32> to vector<256xf32>
    %279 = vector.shape_cast %278 : vector<256xf32> to vector<1x256xf32>
    %280 = vector.broadcast %276 : f32 to vector<1x256xf32>
    %281 = arith.addf %279, %280 : vector<1x256xf32>
    %c1_84 = arith.constant 1 : index
    %c0_85 = arith.constant 0 : index
    %282 = vector.load %arg4[%c1_84, %c0_85] : memref<6x256xf32, #tpu.memory_space<vmem>>, vector<1x256xf32>
    tpu.vector_store %arg4[%c1_84, %c0_85], %281 {strides = array<i32>} : memref<6x256xf32, #tpu.memory_space<vmem>>, vector<1x256xf32>,
    %283 = vector.extract_strided_slice %275 {offsets = [4, 0], sizes = [4, 256], strides = [1, 1]} : vector<8x256xf32> to vector<4x256xf32>
    %cst_86 = arith.constant dense<0.000000e+00> : vector<256xf32>
    %284 = vector.multi_reduction <add>, %283, %cst_86 [0] : vector<4x256xf32> to vector<256xf32>
    %285 = vector.shape_cast %284 : vector<256xf32> to vector<1x256xf32>
    %286 = vector.broadcast %276 : f32 to vector<1x256xf32>
    %287 = arith.addf %285, %286 : vector<1x256xf32>
    %c4_87 = arith.constant 4 : index
    %c0_88 = arith.constant 0 : index
    %288 = vector.load %arg4[%c4_87, %c0_88] : memref<6x256xf32, #tpu.memory_space<vmem>>, vector<1x256xf32>
    tpu.vector_store %arg4[%c4_87, %c0_88], %287 {strides = array<i32>} : memref<6x256xf32, #tpu.memory_space<vmem>>, vector<1x256xf32>,
    %289 = tpu.concatenate %257, %260 in 1 : vector<8x128xf32>, vector<8x128xf32> -> vector<8x256xf32>
    %c2_89 = arith.constant 2 : index
    %290 = memref.load %arg1[%c2_89] : memref<3xf32, #tpu.memory_space<smem>>
    %291 = vector.extract_strided_slice %289 {offsets = [0, 0], sizes = [4, 256], strides = [1, 1]} : vector<8x256xf32> to vector<4x256xf32>
    %cst_90 = arith.constant dense<0.000000e+00> : vector<256xf32>
    %292 = vector.multi_reduction <add>, %291, %cst_90 [0] : vector<4x256xf32> to vector<256xf32>
    %293 = vector.shape_cast %292 : vector<256xf32> to vector<1x256xf32>
    %294 = vector.broadcast %290 : f32 to vector<1x256xf32>
    %295 = arith.addf %293, %294 : vector<1x256xf32>
    %c2_91 = arith.constant 2 : index
    %c0_92 = arith.constant 0 : index
    %296 = vector.load %arg4[%c2_91, %c0_92] : memref<6x256xf32, #tpu.memory_space<vmem>>, vector<1x256xf32>
    tpu.vector_store %arg4[%c2_91, %c0_92], %295 {strides = array<i32>} : memref<6x256xf32, #tpu.memory_space<vmem>>, vector<1x256xf32>,
    %297 = vector.extract_strided_slice %289 {offsets = [4, 0], sizes = [4, 256], strides = [1, 1]} : vector<8x256xf32> to vector<4x256xf32>
    %cst_93 = arith.constant dense<0.000000e+00> : vector<256xf32>
    %298 = vector.multi_reduction <add>, %297, %cst_93 [0] : vector<4x256xf32> to vector<256xf32>
    %299 = vector.shape_cast %298 : vector<256xf32> to vector<1x256xf32>
    %300 = vector.broadcast %290 : f32 to vector<1x256xf32>
    %301 = arith.addf %299, %300 : vector<1x256xf32>
    %c5_94 = arith.constant 5 : index
    %c0_95 = arith.constant 0 : index
    %302 = vector.load %arg4[%c5_94, %c0_95] : memref<6x256xf32, #tpu.memory_space<vmem>>, vector<1x256xf32>
    tpu.vector_store %arg4[%c5_94, %c0_95], %301 {strides = array<i32>} : memref<6x256xf32, #tpu.memory_space<vmem>>, vector<1x256xf32>,
    return
  }
}

</mosaic_0001>

<bundles_post_ra>
// kernel: convolution_layer.1
= control target key start
LH: loop header
LB: loop body
LE: loop exit
PB: predicated region body
PF: predicated region fallthrough
CT: control target
= control target key end

     0   :  { %9 = vsyncpa [#allocation3], 0  ;;  %s520_s18 = smov [#allocation2]   ;;  %s852_s0 = inlined_call_operand.vmem [shape: f32[27,8,128], index: 0, kind: input, shape index: {}]   ;;  %s853_s1 = inlined_call_operand.vmem [shape: f32[3], index: 1, kind: input, shape index: {}]   ;;  %s854_s2 = inlined_call_operand.vmem [shape: s32[8,256], index: 2, kind: input, shape index: {}]   ;;  %s855_s3 = inlined_call_operand.vmem [shape: f32[8,256], index: 3, kind: input, shape index: {}]   ;;  %s856_s4 = inlined_call_operand.vmem [shape: f32[6,256], index: 4, kind: output, shape index: {}]  }
   0x1   :  { %s17_s17 = sshll.u32 %s853_s1, 4  ;;  %s18_s17 = int_to_ptr.vmem [resolvable:$true] %s17_s17 }
   0x2   :  { %20 = dma.vmem_to_smem %s18_s17, 16, %s520_s18, [#allocation3]  }
   0x3   :  { %518 = dma.done.wait [#allocation3], 16  }
   0x4   :  { %519 = vsyncadd [#allocation3], 4294967280 }
   0x5   :  { %29 = sfence }
   0x6   :  { %v560_v0 = vld [vmem:[%s855_s3] sm:$0xff]  ;;  %s521_s21 = smov 16   ;;  %s522_s22 = smov 17   ;;  %v568_v1 = vld [vmem:[%s855_s3 + $0x8] sm:$0xff]  ;;  %v32_v3 = vlaneseq  ;;  %v469_v17 = vld [vmem:[%s852_s0 + $0x30] sm:$0xff] }
   0x7   :  { %73 = vrot.lane.b32.xlu1 %v560_v0, %s521_s21  ;;  %45 = vrot.lane.b32.xlu0 %v560_v0, %s522_s22  ;;  %s523_s23 = smov 15   ;;  %s524_s25 = smov 1   ;;  %v589_v7 = vld [vmem:[%s854_s2] sm:$0xff]  ;;  %v594_v8 = vld [vmem:[%s854_s2 + $0x8] sm:$0xff] }
   0x8   :  { %100 = vrot.lane.b32.xlu2 %v560_v0, %s523_s23  ;;  %s525_s26 = smov 127   ;;  %s526_s27 = smov 113   ;;  %v584_v6 = vand.u32 127, %v32_v3  ;;  %vm43_vm1 = vcmp.lt.s32.totalorder %v589_v7, 15  ;;  %vm41_vm4 = vcmp.ge.s32.totalorder %v589_v7, 1  ;;  %vm44_vm6 = vcmp.lt.s32.totalorder %v594_v8, 15 }
   0x9   :  { %s527_s3 = smov 112   ;;  %s528_s28 = smov 111   ;;  %vm42_vm9 = vcmp.ge.s32.totalorder %v594_v8, 1  ;;  %v470_v18 = vld [vmem:[%s852_s0 + $0x38] sm:$0xff]  ;;  %v467_v22 = vld [vmem:[%s852_s0 + $0x20] sm:$0xff]  ;;  %v464_v25 = vld [vmem:[%s852_s0 + $0x8] sm:$0xff] }
   0xa   :  { %vm37_vm0 = vcmp.ge.s32.totalorder %v584_v6, 16  ;;  %vm104_vm2 = vcmp.lt.s32.totalorder %v584_v6, 15  ;;  %vm77_vm3 = vcmp.lt.s32.totalorder %v584_v6, 16  ;;  %vm49_vm5 = vcmp.lt.s32.totalorder %v584_v6, 17  ;;  %v466_v21 = vld [vmem:[%s852_s0 + $0x18] sm:$0xff]  ;;  %v56_v24 = vld [vmem:[%s852_s0] sm:$0xff] }
   0xb   :  { %vm107_vm7 = vmand %vm37_vm0, %vm43_vm1  ;;  %vm133_vm10 = vcmp.lt.s32.totalorder %v584_v6, 1  ;;  %v471_v30 = vld [vmem:[%s852_s0 + $0x40] sm:$0xff]  ;;  %v468_v35 = vld [vmem:[%s852_s0 + $0x28] sm:$0xff]  ;;  %v666_v57 = vadd.s32 128, %v584_v6  ;;  %vm178_vm11 = vcmp.lt.s32.totalorder %v584_v6, 127  ;;  %vm205_vm13 = vcmp.lt.s32.totalorder %v584_v6, 113 }
   0xc   :  { %vm52_vm8 = vmand %vm37_vm0, %vm41_vm4  ;;  %v465_v36 = vld [vmem:[%s852_s0 + $0x10] sm:$0xff]  ;;  %v475_v51 = vld [vmem:[%s852_s0 + $0x60] sm:$0xff]  ;;  %vm234_vm15 = vcmp.lt.s32.totalorder %v584_v6, 112  ;;  %s744_s24 = sld [smem:[#allocation2]] }
   0xd   :  { %v476_v52 = vld [vmem:[%s852_s0 + $0x68] sm:$0xff]  ;;  %v477_v56 = vld [vmem:[%s852_s0 + $0x70] sm:$0xff]  ;;  %vm40_vm12 = vcmp.lt.s32.totalorder %v666_v57, 240 }
   0xe   :  { %v472_v61 = vld [vmem:[%s852_s0 + $0x48] sm:$0xff]  ;;  %v473_v62 = vld [vmem:[%s852_s0 + $0x50] sm:$0xff]  ;;  %vm209_vm14 = vmand %vm40_vm12, %vm42_vm9 }
   0xf   :  { %75 = vrot.lane.b32.xlu1 %v568_v1, %s521_s21  ;;  %47 = vrot.lane.b32.xlu0 %v568_v1, %s522_s22  ;;  %v489_v57 = vld [vmem:[%s852_s0 + $0xd0] sm:$0xff] }
  0x10   :  { %102 = vrot.lane.b32.xlu2 %v568_v1, %s523_s23 }
  0x17   :  { %131 = vrot.lane.b32.xlu1 %v568_v1, %s524_s25  ;;  %129 = vrot.lane.b32.xlu0 %v560_v0, %s524_s25  ;;  %s747_s25 = sld [smem:[#allocation2 + $0x1]] }
  0x18   :  { %174 = vrot.lane.b32.xlu2 %v560_v0, %s525_s26 }
  0x1d   :  { %v778_v7 = vstv %s747_s25 }
  0x1f   :  { %201 = vrot.lane.b32.xlu1 %v560_v0, %s526_s27  ;;  %176 = vrot.lane.b32.xlu0 %v568_v1, %s525_s26 }
  0x20   :  { %203 = vrot.lane.b32.xlu2 %v568_v1, %s526_s27 }
  0x27   :  { %232 = vrot.lane.b32.xlu1 %v568_v1, %s527_s3  ;;  %230 = vrot.lane.b32.xlu0 %v560_v0, %s527_s3 }
  0x28   :  { %257 = vrot.lane.b32.xlu2 %v560_v0, %s528_s28 }
  0x2f   :  { %259 = vrot.lane.b32.xlu0 %v568_v1, %s528_s28 }
  0x62   :  { %v101_v2 = vpop.permute.xlu2 %100 }
  0x6a   :  { %v103_v9 = vpop.permute.xlu2 %102 }
  0x6b   :  { %v105_v10 = vsel %vm104_vm2, %v101_v2, %v103_v9  ;;  %v106_v11 = vsel %vm104_vm2, %v103_v9, %v101_v2  ;;  %v160_v9 = vmul.f32 %v475_v51, %v568_v1  ;;  %vm287_vm2 = vcmask 1043456  }
  0x6c   :  { %v109_v19 = vsel %vm107_vm7, %v106_v11, 0.0  ;;  %v110_v20 = vsel %vm44_vm6, %v105_v10, 0.0  ;;  %v166_v10 = vmul.f32 %v476_v52, %v568_v1 }
  0x6d   :  { %v113_v31 = vmul.f32 %v469_v17, %v109_v19  ;;  %v115_v32 = vmul.f32 %v469_v17, %v110_v20  ;;  %v119_v33 = vmul.f32 %v470_v18, %v109_v19  ;;  %v121_v34 = vmul.f32 %v470_v18, %v110_v20 }
  0x6e   :  { %v125_v47 = vmul.f32 %v471_v30, %v109_v19  ;;  %v127_v58 = vmul.f32 %v471_v30, %v110_v20 }
  0x72   :  { %v641_v29 = vpop.permute.xlu2 %174 }
  0x79   :  { %v74_v4 = vpop.permute.xlu1 %73  ;;  %v46_v5 = vpop.permute.xlu0 %45 }
  0x7a   :  { %v204_v20 = vpop.permute.xlu2 %203 }
  0x81   :  { %v76_v12 = vpop.permute.xlu1 %75  ;;  %v48_v13 = vpop.permute.xlu0 %47 }
  0x82   :  { %v79_v14 = vsel %vm77_vm3, %v76_v12, %v74_v4  ;;  %v51_v15 = vsel %vm49_vm5, %v48_v13, %v46_v5  ;;  %v50_v16 = vsel %vm49_vm5, %v46_v5, %v48_v13  ;;  %v78_v27 = vsel %vm77_vm3, %v74_v4, %v76_v12  ;;  %v474_v5 = vld [vmem:[%s852_s0 + $0x58] sm:$0xff]  ;;  %vm753_vm3 = vmand %vm40_vm12, %vm44_vm6 }
  0x83   :  { %v80_v23 = vsel %vm37_vm0, %v79_v14, 0.0  ;;  %v54_v26 = vsel %vm52_vm8, %v51_v15, 0.0  ;;  %v55_v28 = vsel %vm42_vm9, %v50_v16, 0.0  ;;  %v86_v41 = vmul.f32 %v466_v21, %v78_v27 }
  0x84   :  { %v84_v37 = vmul.f32 %v466_v21, %v80_v23  ;;  %v90_v38 = vmul.f32 %v467_v22, %v80_v23  ;;  %v57_v39 = vmul.f32 %v56_v24, %v54_v26  ;;  %v63_v40 = vmul.f32 %v464_v25, %v54_v26 }
  0x85   :  { %v92_v42 = vmul.f32 %v467_v22, %v78_v27  ;;  %v59_v43 = vmul.f32 %v56_v24, %v55_v28  ;;  %v65_v44 = vmul.f32 %v464_v25, %v55_v28  ;;  %v98_v48 = vmul.f32 %v468_v35, %v78_v27 }
  0x86   :  { %v71_v49 = vmul.f32 %v465_v36, %v55_v28  ;;  %v96_v53 = vmul.f32 %v468_v35, %v80_v23  ;;  %v69_v54 = vmul.f32 %v465_v36, %v54_v26  ;;  %v85_v59 = vadd.f32 %v84_v37, %v57_v39  ;;  %v478_v36 = vld [vmem:[%s852_s0 + $0x78] sm:$0xff]  ;;  %v479_v37 = vld [vmem:[%s852_s0 + $0x80] sm:$0xff] }
  0x87   :  { %v91_v60 = vadd.f32 %v90_v38, %v63_v40  ;;  %v87_v2 = vadd.f32 %v86_v41, %v59_v43  ;;  %v93_v4 = vadd.f32 %v92_v42, %v65_v44  ;;  %v172_v13 = vmul.f32 %v477_v56, %v568_v1 }
  0x88   :  { %v99_v11 = vadd.f32 %v98_v48, %v71_v49  ;;  %v97_v14 = vadd.f32 %v96_v53, %v69_v54  ;;  %v114_v17 = vadd.f32 %v113_v31, %v85_v59  ;;  %v158_v42 = vmul.f32 %v475_v51, %v560_v0  ;;  %v481_v51 = vld [vmem:[%s852_s0 + $0x90] sm:$0xff] }
  0x89   :  { %v132_v45 = vpop.permute.xlu1 %131  ;;  %v130_v46 = vpop.permute.xlu0 %129  ;;  %v120_v18 = vadd.f32 %v119_v33, %v91_v60  ;;  %v116_v21 = vadd.f32 %v115_v32, %v87_v2  ;;  %v122_v22 = vadd.f32 %v121_v34, %v93_v4  ;;  %v164_v43 = vmul.f32 %v476_v52, %v560_v0  ;;  %v483_v4 = vld [vmem:[%s852_s0 + $0xa0] sm:$0xff] }
  0x8a   :  { %v134_v50 = vsel %vm133_vm10, %v130_v46, %v132_v45  ;;  %v135_v55 = vsel %vm133_vm10, %v132_v45, %v130_v46  ;;  %v128_v1 = vadd.f32 %v127_v58, %v99_v11  ;;  %v126_v31 = vadd.f32 %v125_v47, %v97_v14  ;;  %v480_v45 = vld [vmem:[%s852_s0 + $0x88] sm:$0xff] }
  0x8b   :  { %v137_v63 = vsel %vm42_vm9, %v134_v50, 0.0  ;;  %v136_v12 = vsel %vm41_vm4, %v135_v55, 0.0  ;;  %v170_v46 = vmul.f32 %v477_v56, %v560_v0  ;;  %v484_v14 = vld [vmem:[%s852_s0 + $0xa8] sm:$0xff]  ;;  %vm261_vm0 = vcmp.lt.s32.totalorder %v584_v6, 111 }
  0x8c   :  { %v142_v15 = vmul.f32 %v472_v61, %v137_v63  ;;  %v148_v16 = vmul.f32 %v473_v62, %v137_v63  ;;  %v154_v19 = vmul.f32 %v474_v5, %v137_v63  ;;  %v140_v23 = vmul.f32 %v472_v61, %v136_v12  ;;  %v482_v61 = vld [vmem:[%s852_s0 + $0x98] sm:$0xff] }
  0x8d   :  { %v146_v24 = vmul.f32 %v473_v62, %v136_v12  ;;  %v152_v27 = vmul.f32 %v474_v5, %v136_v12 }
  0x8e   :  { %v143_v33 = vadd.f32 %v142_v15, %v116_v21  ;;  %v149_v35 = vadd.f32 %v148_v16, %v122_v22  ;;  %v155_v34 = vadd.f32 %v154_v19, %v128_v1  ;;  %v141_v40 = vadd.f32 %v140_v23, %v114_v17  ;;  %v485_v15 = vld [vmem:[%s852_s0 + $0xb0] sm:$0xff] }
  0x8f   :  { %v147_v41 = vadd.f32 %v146_v24, %v120_v18  ;;  %v153_v44 = vadd.f32 %v152_v27, %v126_v31 }
  0x90   :  { %v161_v53 = vadd.f32 %v160_v9, %v143_v33  ;;  %v167_v54 = vadd.f32 %v166_v10, %v149_v35  ;;  %v173_v55 = vadd.f32 %v172_v13, %v155_v34  ;;  %v159_v59 = vadd.f32 %v158_v42, %v141_v40  ;;  %v488_v40 = vld [vmem:[%s852_s0 + $0xc8] sm:$0xff] }
  0x91   :  { %v202_v25 = vpop.permute.xlu1 %201  ;;  %v177_v26 = vpop.permute.xlu0 %176  ;;  %v165_v60 = vadd.f32 %v164_v43, %v147_v41  ;;  %v171_v2 = vadd.f32 %v170_v46, %v153_v44 }
  0x92   :  { %v179_v28 = vsel %vm178_vm11, %v641_v29, %v177_v26  ;;  %v180_v30 = vsel %vm178_vm11, %v177_v26, %v641_v29  ;;  %v206_v32 = vsel %vm205_vm13, %v202_v25, %v204_v20  ;;  %v207_v39 = vsel %vm205_vm13, %v204_v20, %v202_v25  ;;  %v486_v25 = vld [vmem:[%s852_s0 + $0xb8] sm:$0xff] }
  0x93   :  { %v181_v38 = vsel %vm43_vm1, %v179_v28, 0.0  ;;  %v182_v29 = vsel %vm44_vm6, %v180_v30, 0.0  ;;  %v210_v47 = vsel %vm41_vm4, %v206_v32, 0.0  ;;  %v211_v52 = vsel %vm209_vm14, %v207_v39, 0.0  ;;  %v258_v30 = vpop.permute.xlu2 %257  ;;  %v487_v39 = vld [vmem:[%s852_s0 + $0xc0] sm:$0xff]  ;;  %s809_s0 = sld [smem:[#allocation2 + $0x2]] }
  0x94   :  { %v185_v48 = vmul.f32 %v478_v36, %v181_v38  ;;  %v187_v49 = vmul.f32 %v478_v36, %v182_v29  ;;  %v191_v50 = vmul.f32 %v479_v37, %v181_v38  ;;  %v193_v58 = vmul.f32 %v479_v37, %v182_v29 }
  0x95   :  { %v197_v0 = vmul.f32 %v480_v45, %v181_v38  ;;  %v199_v56 = vmul.f32 %v480_v45, %v182_v29  ;;  %v214_v5 = vmul.f32 %v481_v51, %v210_v47  ;;  %v216_v9 = vmul.f32 %v481_v51, %v211_v52 }
  0x96   :  { %v186_v11 = vadd.f32 %v185_v48, %v159_v59  ;;  %v188_v12 = vadd.f32 %v187_v49, %v161_v53  ;;  %v192_v13 = vadd.f32 %v191_v50, %v165_v60  ;;  %v194_v17 = vadd.f32 %v193_v58, %v167_v54 }
  0x97   :  { %v220_v18 = vmul.f32 %v482_v61, %v210_v47  ;;  %v222_v19 = vmul.f32 %v482_v61, %v211_v52  ;;  %v198_v21 = vadd.f32 %v197_v0, %v171_v2  ;;  %v200_v22 = vadd.f32 %v199_v56, %v173_v55 }
  0x98   :  { %v226_v23 = vmul.f32 %v483_v4, %v210_v47  ;;  %v228_v24 = vmul.f32 %v483_v4, %v211_v52  ;;  %v215_v31 = vadd.f32 %v214_v5, %v186_v11  ;;  %v217_v33 = vadd.f32 %v216_v9, %v188_v12 }
  0x99   :  { %v233_v62 = vpop.permute.xlu1 %232  ;;  %v231_v63 = vpop.permute.xlu0 %230  ;;  %v221_v35 = vadd.f32 %v220_v18, %v192_v13  ;;  %v223_v32 = vadd.f32 %v222_v19, %v194_v17  ;;  %v775_v56 = vstv %s744_s24  ;;  %vm793_vm4 = vcmp.lt.s32.totalorder %v32_v3, 256 }
  0x9a   :  { %v236_v10 = vsel %vm234_vm15, %v233_v62, %v231_v63  ;;  %v235_v16 = vsel %vm234_vm15, %v231_v63, %v233_v62  ;;  %v227_v36 = vadd.f32 %v226_v23, %v198_v21  ;;  %v229_v37 = vadd.f32 %v228_v24, %v200_v22 }
  0x9b   :  { %v238_v20 = vsel %vm40_vm12, %v236_v10, 0.0  ;;  %v241_v26 = vmul.f32 %v484_v14, %v235_v16  ;;  %v247_v1 = vmul.f32 %v485_v15, %v235_v16  ;;  %v253_v38 = vmul.f32 %v486_v25, %v235_v16 }
  0x9c   :  { %v243_v27 = vmul.f32 %v484_v14, %v238_v20  ;;  %v249_v28 = vmul.f32 %v485_v15, %v238_v20  ;;  %v255_v29 = vmul.f32 %v486_v25, %v238_v20 }
  0x9d   :  { %v242_v8 = vadd.f32 %v241_v26, %v215_v31  ;;  %v248_v42 = vadd.f32 %v247_v1, %v221_v35  ;;  %v254_v53 = vadd.f32 %v253_v38, %v227_v36 }
  0x9e   :  { %v244_v45 = vadd.f32 %v243_v27, %v217_v33  ;;  %v250_v46 = vadd.f32 %v249_v28, %v223_v32  ;;  %v256_v54 = vadd.f32 %v255_v29, %v229_v37 }
  0xa1   :  { %v260_v41 = vpop.permute.xlu0 %259 }
  0xa2   :  { %v262_v43 = vsel %vm261_vm0, %v258_v30, %v260_v41  ;;  %v263_v44 = vsel %vm261_vm0, %v260_v41, %v258_v30 }
  0xa3   :  { %v266_v47 = vsel %vm43_vm1, %v262_v43, 0.0  ;;  %v267_v48 = vsel %vm753_vm3, %v263_v44, 0.0  ;;  %vm308_vm1 = vcmask 1040384  }
  0xa4   :  { %v270_v49 = vmul.f32 %v487_v39, %v266_v47  ;;  %v272_v50 = vmul.f32 %v487_v39, %v267_v48  ;;  %v276_v51 = vmul.f32 %v488_v40, %v266_v47  ;;  %v278_v52 = vmul.f32 %v488_v40, %v267_v48 }
  0xa5   :  { %v282_v55 = vmul.f32 %v489_v57, %v266_v47  ;;  %v284_v58 = vmul.f32 %v489_v57, %v267_v48 }
  0xa6   :  { %v271_v6 = vadd.f32 %v270_v49, %v242_v8  ;;  %v273_v59 = vadd.f32 %v272_v50, %v244_v45  ;;  %v277_v60 = vadd.f32 %v276_v51, %v248_v42  ;;  %v279_v0 = vadd.f32 %v278_v52, %v250_v46 }
  0xa7   :  { %v780_v61 = vadd.f32 %v282_v55, %v254_v53  ;;  %v782_v62 = vadd.f32 %v284_v58, %v256_v54 }
  0xa8   :  { %v288_v63 = vsel %vm287_vm2, %v271_v6, 0.0  ;;  %v295_v2 = vsel %vm287_vm2, %v273_v59, 0.0  ;;  %v319_v4 = vrot.slane %v271_v6, 4  ;;  %v320_v5 = vrot.slane %v273_v59, 4 }
  0xa9   :  { %v289_v9 = vrot.slane %v288_v63, 4  ;;  %v296_v10 = vrot.slane %v295_v2, 4  ;;  %v348_v11 = vsel %vm287_vm2, %v277_v60, 0.0  ;;  %v355_v12 = vsel %vm287_vm2, %v279_v0, 0.0 }
  0xaa   :  { %v323_v13 = vsel %vm287_vm2, %v319_v4, 0.0  ;;  %v330_v14 = vsel %vm287_vm2, %v320_v5, 0.0  ;;  %v349_v15 = vrot.slane %v348_v11, 4  ;;  %v356_v16 = vrot.slane %v355_v12, 4 }
  0xab   :  { %v290_v17 = vadd.f32 %v289_v9, %v288_v63  ;;  %v297_v18 = vadd.f32 %v296_v10, %v295_v2  ;;  %v324_v19 = vrot.slane %v323_v13, 4  ;;  %v331_v20 = vrot.slane %v330_v14, 4 }
  0xac   :  { %v350_v21 = vadd.f32 %v349_v15, %v348_v11  ;;  %v357_v22 = vadd.f32 %v356_v16, %v355_v12  ;;  %v375_v23 = vrot.slane %v277_v60, 4  ;;  %v376_v24 = vrot.slane %v279_v0, 4 }
  0xad   :  { %v291_v25 = vrot.slane %v290_v17, 2  ;;  %v298_v26 = vrot.slane %v297_v18, 2  ;;  %v325_v1 = vadd.f32 %v324_v19, %v323_v13  ;;  %v332_v27 = vadd.f32 %v331_v20, %v330_v14 }
  0xae   :  { %v351_v28 = vrot.slane %v350_v21, 2  ;;  %v358_v30 = vrot.slane %v357_v22, 2  ;;  %v379_v31 = vsel %vm287_vm2, %v375_v23, 0.0  ;;  %v386_v33 = vsel %vm287_vm2, %v376_v24, 0.0 }
  0xaf   :  { %v292_v32 = vadd.f32 %v291_v25, %v290_v17  ;;  %v299_v34 = vadd.f32 %v298_v26, %v297_v18  ;;  %v326_v36 = vrot.slane %v325_v1, 2  ;;  %v333_v37 = vrot.slane %v332_v27, 2 }
  0xb0   :  { %v352_v38 = vadd.f32 %v351_v28, %v350_v21  ;;  %v359_v29 = vadd.f32 %v358_v30, %v357_v22  ;;  %v380_v39 = vrot.slane %v379_v31, 4  ;;  %v387_v40 = vrot.slane %v386_v33, 4 }
  0xb1   :  { %v293_v41 = vrot.slane %v292_v32, 1  ;;  %v300_v8 = vrot.slane %v299_v34, 1  ;;  %v327_v42 = vadd.f32 %v326_v36, %v325_v1  ;;  %v334_v57 = vadd.f32 %v333_v37, %v332_v27 }
  0xb2   :  { %v353_v43 = vrot.slane %v352_v38, 1  ;;  %v360_v44 = vrot.slane %v359_v29, 1  ;;  %v381_v45 = vadd.f32 %v380_v39, %v379_v31  ;;  %v388_v46 = vadd.f32 %v387_v40, %v386_v33 }
  0xb3   :  { %v294_v3 = vadd.f32 %v293_v41, %v292_v32  ;;  %v301_v47 = vadd.f32 %v300_v8, %v299_v34  ;;  %v328_v48 = vrot.slane %v327_v42, 1  ;;  %v335_v49 = vrot.slane %v334_v57, 1 }
  0xb4   :  { %v354_v50 = vadd.f32 %v353_v43, %v352_v38  ;;  %v361_v51 = vadd.f32 %v360_v44, %v359_v29  ;;  %v382_v52 = vrot.slane %v381_v45, 2  ;;  %v389_v53 = vrot.slane %v388_v46, 2 }
  0xb5   :  { %v303_v54 = vadd.f32 %v775_v56, %v294_v3  ;;  %v304_v55 = vadd.f32 %v775_v56, %v301_v47  ;;  %v329_v58 = vadd.f32 %v328_v48, %v327_v42  ;;  %v336_v6 = vadd.f32 %v335_v49, %v334_v57 }
  0xb6   :  { %v363_v59 = vadd.f32 %v778_v7, %v354_v50  ;;  %v364_v60 = vadd.f32 %v778_v7, %v361_v51  ;;  %v383_v0 = vadd.f32 %v382_v52, %v381_v45  ;;  %v390_v63 = vadd.f32 %v389_v53, %v388_v46 }
  0xb7   :  { %v307_v2 = vrot.slane %v304_v55, 7  ;;  %v337_v4 = vadd.f32 %v329_v58, %v775_v56  ;;  %v338_v5 = vadd.f32 %v336_v6, %v775_v56  ;;  %v404_v9 = vsel %vm287_vm2, %v780_v61, 0.0 }
  0xb8   :  { %v367_v10 = vrot.slane %v364_v60, 7  ;;  %v384_v11 = vrot.slane %v383_v0, 1  ;;  %v391_v12 = vrot.slane %v390_v63, 1  ;;  %v405_v13 = vrot.slane %v404_v9, 4 }
  0xb9   :  { %v309_v14 = vsel %vm308_vm1, %v303_v54, %v307_v2  ;;  %v341_v15 = vrot.slane %v338_v5, 7  ;;  %v411_v16 = vsel %vm287_vm2, %v782_v62, 0.0  ;;  %v431_v17 = vrot.slane %v780_v61, 4 }
  0xba   :  { %315 = vst.msk [vmem:[%s856_s4] ss:$8 sm:$0x3] %vm793_vm4, %v309_v14  ;;  %v368_v56 = vsel %vm308_vm1, %v363_v59, %v367_v10  ;;  %v385_v18 = vadd.f32 %v384_v11, %v383_v0  ;;  %v392_v19 = vadd.f32 %v391_v12, %v390_v63  ;;  %v406_v20 = vadd.f32 %v405_v13, %v404_v9 }
  0xbb   :  { %v342_v21 = vsel %vm308_vm1, %v337_v4, %v341_v15  ;;  %492 = vst.msk [vmem:[%s856_s4 + $0x1] ss:$8 sm:$0x3] %vm793_vm4, %v368_v56  ;;  %v412_v61 = vrot.slane %v411_v16, 4  ;;  %v432_v22 = vrot.slane %v782_v62, 4  ;;  %v435_v23 = vsel %vm287_vm2, %v431_v17, 0.0 }
  0xbc   :  { %490 = vst.msk [vmem:[%s856_s4 + $0x3] ss:$8 sm:$0x3] %vm793_vm4, %v342_v21  ;;  %v394_v24 = vadd.f32 %v392_v19, %v778_v7  ;;  %v407_v25 = vrot.slane %v406_v20, 2  ;;  %v436_v26 = vrot.slane %v435_v23, 4  ;;  %v393_v1 = vadd.f32 %v385_v18, %v778_v7 }
  0xbd   :  { %v413_v27 = vadd.f32 %v412_v61, %v411_v16  ;;  %v442_v28 = vsel %vm287_vm2, %v432_v22, 0.0  ;;  %v418_v41 = vstv %s809_s0 }
  0xbe   :  { %v397_v30 = vrot.slane %v394_v24, 7  ;;  %v408_v62 = vadd.f32 %v407_v25, %v406_v20  ;;  %v437_v31 = vadd.f32 %v436_v26, %v435_v23  ;;  %v443_v33 = vrot.slane %v442_v28, 4 }
  0xbf   :  { %v414_v32 = vrot.slane %v413_v27, 2 }
  0xc0   :  { %v398_v34 = vsel %vm308_vm1, %v393_v1, %v397_v30  ;;  %v438_v36 = vrot.slane %v437_v31, 2  ;;  %v444_v37 = vadd.f32 %v443_v33, %v442_v28  ;;  %v409_v7 = vrot.slane %v408_v62, 1 }
  0xc1   :  { %493 = vst.msk [vmem:[%s856_s4 + $0x4] ss:$8 sm:$0x3] %vm793_vm4, %v398_v34  ;;  %v415_v38 = vadd.f32 %v414_v32, %v413_v27 }
  0xc2   :  { %v439_v29 = vadd.f32 %v438_v36, %v437_v31  ;;  %v445_v39 = vrot.slane %v444_v37, 2  ;;  %v410_v57 = vadd.f32 %v409_v7, %v408_v62 }
  0xc3   :  { %v416_v40 = vrot.slane %v415_v38, 1 }
  0xc4   :  { %v440_v8 = vrot.slane %v439_v29, 1  ;;  %v446_v42 = vadd.f32 %v445_v39, %v444_v37  ;;  %v419_v47 = vadd.f32 %v418_v41, %v410_v57 }
  0xc5   :  { %v417_v43 = vadd.f32 %v416_v40, %v415_v38 }
  0xc6   :  { %v447_v44 = vrot.slane %v446_v42, 1  ;;  %v441_v46 = vadd.f32 %v440_v8, %v439_v29 }
  0xc7   :  { %v420_v45 = vadd.f32 %v418_v41, %v417_v43 }
  0xc8   :  { %v448_v3 = vadd.f32 %v447_v44, %v446_v42  ;;  %v449_v51 = vadd.f32 %v441_v46, %v418_v41 }
  0xc9   :  { %v423_v48 = vrot.slane %v420_v45, 7 }
  0xca   :  { %v450_v49 = vadd.f32 %v448_v3, %v418_v41 }
  0xcb   :  { %v424_v50 = vsel %vm308_vm1, %v419_v47, %v423_v48 }
  0xcc   :  { %495 = vst.msk [vmem:[%s856_s4 + $0x2] ss:$8 sm:$0x3] %vm793_vm4, %v424_v50  ;;  %v453_v52 = vrot.slane %v450_v49, 7 }
  0xce   :  { %v454_v53 = vsel %vm308_vm1, %v449_v51, %v453_v52 }
  0xcf   :  { %496 = vst.msk [vmem:[%s856_s4 + $0x5] ss:$8 sm:$0x3] %vm793_vm4, %v454_v53 }
  0xd0   :  { %463 = vsyncpa [#allocation3], 1 }

</bundles_post_ra>
